<compile_context>
chip_gen: v7x
topology: tpu7x:2x2x1
jax: 0.10.0
libtpu: 0.0.40
codegen_flags: <defaults>
</compile_context>

<pallas_src>
import functools

import jax
import jax.numpy as jnp
from jax.experimental import pallas as pl
from jax.experimental.pallas import tpu as pltpu

LANES = 128
SUBLANES = 8
NUM_CORES = 2  # leading 'parallel' grid axis; v7x has 2 TensorCores per chip.


def _masked_mse_kernel(pred_ref, true_ref, out_ref, sum_acc, cnt_acc,
                       *, rows, tile_rows, steps_per_core):
    c = pl.program_id(0)   # core slice        ('parallel')
    i = pl.program_id(1)   # streaming step    ('arbitrary')

    @pl.when(i == 0)
    def _():
        sum_acc[...] = jnp.zeros_like(sum_acc)
        cnt_acc[...] = jnp.zeros_like(cnt_acc)

    # Load in native dtype, upcast in-register (halves HBM traffic for bf16).
    t = true_ref[...].astype(jnp.float32)
    p = pred_ref[...].astype(jnp.float32)

    # Nominal (unclamped) block index along the row axis.
    block = c * steps_per_core + i

    def _accumulate(row_mask):
        mask = t != jnp.float32(-1.0)
        if row_mask is not None:
            mask = jnp.logical_and(mask, row_mask)
        diff = jnp.where(mask, t - p, jnp.float32(0.0))
        sq = diff * diff
        cnt = mask.astype(jnp.float32)
        # Fold (tile_rows, 128) -> (8, 128): layout-native reshape + pure
        # vreg-wise VPU adds (no cross-lane traffic, no big scratch stores).
        sum_acc[...] += jnp.sum(
            sq.reshape(tile_rows // SUBLANES, SUBLANES, LANES), axis=0)
        cnt_acc[...] += jnp.sum(
            cnt.reshape(tile_rows // SUBLANES, SUBLANES, LANES), axis=0)

    # Fast path (steady state): block lies fully inside [0, rows).
    @pl.when((block + 1) * tile_rows <= rows)
    def _():
        _accumulate(None)

    # Slow path: ragged last block or padded/duplicate grid slot -> mask rows.
    @pl.when((block + 1) * tile_rows > rows)
    def _():
        row_ids = jax.lax.broadcasted_iota(jnp.int32, (tile_rows, LANES), 0)
        _accumulate(row_ids < rows - block * tile_rows)

    # Per-core epilogue: one small (8,128) cross-lane reduce + one store.
    @pl.when(i == pl.num_programs(1) - 1)
    def _():
        total_sum = jnp.sum(sum_acc[...])
        total_cnt = jnp.sum(cnt_acc[...])
        sub = jax.lax.broadcasted_iota(jnp.int32, (SUBLANES, LANES), 0)
        lane = jax.lax.broadcasted_iota(jnp.int32, (SUBLANES, LANES), 1)
        vals = jnp.where((sub == 0) & (lane == 0), total_sum,
                         jnp.where((sub == 0) & (lane == 1), total_cnt,
                                   jnp.float32(0.0)))
        out_ref[0] = vals


def _masked_sq_sum_count(pred, true):
    """Tiny pure-JAX reduction used for the <128-element ragged tail."""
    t = true.astype(jnp.float32)
    p = pred.astype(jnp.float32)
    m = t != jnp.float32(-1.0)
    d = jnp.where(m, t - p, jnp.float32(0.0))
    return jnp.sum(d * d), jnp.sum(m.astype(jnp.float32))


def masked_mse_loss(pred, true, *, max_tile_rows=2048):
    """Pallas equivalent of MyLoss_Pretrain.forward(pred, true)."""
    assert pred.shape == true.shape
    n = pred.size

    pred_flat = pred.reshape(-1)
    true_flat = true.reshape(-1)

    rows = n // LANES
    n_main = rows * LANES

    # Tiny input (< 8*128 elements): not worth a kernel launch.
    if rows < SUBLANES:
        s, cnt = _masked_sq_sum_count(pred_flat, true_flat)
        return s / cnt

    # Ragged tail (< 128 elements): separate tiny reduction, main body stays
    # pad-free (no full-array concatenate / copy of padded data).
    if n_main != n:
        tail_sum, tail_cnt = _masked_sq_sum_count(pred_flat[n_main:],
                                                  true_flat[n_main:])
        pred_flat = jax.lax.slice(pred_flat, (0,), (n_main,))
        true_flat = jax.lax.slice(true_flat, (0,), (n_main,))
    else:
        tail_sum = tail_cnt = None

    pred2d = pred_flat.reshape(rows, LANES)
    true2d = true_flat.reshape(rows, LANES)

    # Tile rows: a multiple of 8, never larger than the array, so every
    # (clamped) block index maps to a real block of the input.
    tile_rows = min(max_tile_rows, rows)
    tile_rows = max(SUBLANES, (tile_rows // SUBLANES) * SUBLANES)

    steps_total = pl.cdiv(rows, tile_rows)
    steps_per_core = pl.cdiv(steps_total, NUM_CORES)
    last_block = steps_total - 1

    def in_index_map(c, i):
        # Clamp so padded grid slots never DMA past the end of the array;
        # their contribution is masked to zero inside the kernel.
        return (jnp.minimum(c * steps_per_core + i, last_block), 0)

    kernel = functools.partial(
        _masked_mse_kernel, rows=rows, tile_rows=tile_rows,
        steps_per_core=steps_per_core)

    out = pl.pallas_call(
        kernel,
        out_shape=jax.ShapeDtypeStruct((NUM_CORES, SUBLANES, LANES),
                                       jnp.float32),
        grid_spec=pltpu.PrefetchScalarGridSpec(
            num_scalar_prefetch=0,
            grid=(NUM_CORES, steps_per_core),
            in_specs=[
                pl.BlockSpec((tile_rows, LANES), in_index_map),
                pl.BlockSpec((tile_rows, LANES), in_index_map),
            ],
            out_specs=pl.BlockSpec((1, SUBLANES, LANES),
                                   lambda c, i: (c, 0, 0)),
            scratch_shapes=[
                pltpu.VMEM((SUBLANES, LANES), jnp.float32),  # sum of squares
                pltpu.VMEM((SUBLANES, LANES), jnp.float32),  # valid count
            ],
        ),
        compiler_params=pltpu.CompilerParams(
            dimension_semantics=("parallel", "arbitrary")),
    )(pred2d, true2d)

    # Combine the per-core partials (and ragged tail, if any), then divide.
    total_sum = jnp.sum(out[:, 0, 0])
    total_cnt = jnp.sum(out[:, 0, 1])
    if tail_sum is not None:
        total_sum = total_sum + tail_sum
        total_cnt = total_cnt + tail_cnt
    return total_sum / total_cnt


def _reference_loss(pred, true):
    pred = pred.astype(jnp.float32)
    true = true.astype(jnp.float32)
    mask = (true != -1.0)
    diff = jnp.where(mask, true - pred, 0.0)
    return jnp.sum(diff * diff) / jnp.sum(mask.astype(jnp.float32))


if __name__ == "__main__":
    key = jax.random.PRNGKey(0)
    keys = jax.random.split(key, 9)

    # Test 1: NCHW dense-prediction target (module's typical use), single-step.
    shape = (2, 4, 16, 16)
    pred = jax.random.normal(keys[0], shape, dtype=jnp.float32)
    true = jax.random.normal(keys[1], shape, dtype=jnp.float32)
    invalid = jax.random.uniform(keys[2], shape) < 0.3   # ~30% missing labels
    true = jnp.where(invalid, jnp.float32(-1.0), true)

    loss = masked_mse_loss(pred, true)
    jax.block_until_ready(loss)
    ref = _reference_loss(pred, true)
    assert jnp.allclose(loss, ref, rtol=1e-5, atol=1e-6), (loss, ref)

    # Test 2: ragged size (not a multiple of 128) + ragged last block.
    shape2 = (5, 300)   # 1500 elements -> 11 main rows + 92-element tail
    pred2 = jax.random.normal(keys[3], shape2, dtype=jnp.float32)
    true2 = jax.random.normal(keys[4], shape2, dtype=jnp.float32)
    invalid2 = jax.random.uniform(keys[5], shape2) < 0.5
    true2 = jnp.where(invalid2, jnp.float32(-1.0), true2)

    loss2 = masked_mse_loss(pred2, true2, max_tile_rows=8)
    jax.block_until_ready(loss2)
    ref2 = _reference_loss(pred2, true2)
    assert jnp.allclose(loss2, ref2, rtol=1e-5, atol=1e-6), (loss2, ref2)

    # Test 3: multi-step inner loop on both core slices (accumulation + reset).
    shape3 = (64, 256)  # 16384 elements -> 128 rows, 8 blocks of 16 rows
    pred3 = jax.random.normal(keys[6], shape3, dtype=jnp.float32)
    true3 = jax.random.normal(keys[7], shape3, dtype=jnp.float32)
    invalid3 = jax.random.uniform(keys[8], shape3) < 0.4
    true3 = jnp.where(invalid3, jnp.float32(-1.0), true3)

    loss3 = masked_mse_loss(pred3, true3, max_tile_rows=16)
    jax.block_until_ready(loss3)
    ref3 = _reference_loss(pred3, true3)
    assert jnp.allclose(loss3, ref3, rtol=1e-5, atol=1e-6), (loss3, ref3)

    print("KERNEL_OK")
</pallas_src>

<mosaic_0001>
module attributes {stable_mosaic.version = 11 : i64} {
  func.func @_masked_mse_kernel(%arg0: i32, %arg1: i32, %arg2: memref<16x128xf32, #tpu.memory_space<vmem>>, %arg3: memref<16x128xf32, #tpu.memory_space<vmem>>, %arg4: memref<1x8x128xf32, #tpu.memory_space<vmem>>, %arg5: memref<8x128xf32, #tpu.memory_space<vmem>>, %arg6: memref<8x128xf32, #tpu.memory_space<vmem>>) attributes {dimension_semantics = [#tpu.dimension_semantics<parallel>, #tpu.dimension_semantics<arbitrary>], iteration_bounds = array<i64: 2, 1>, scalar_prefetch = 0 : i64, scratch_operands = 2 : i64, tpu.core_type = #tpu.core_type<tc>, window_params = [{transform_indices = @transform_0, window_bounds = array<i64: 16, 128>}, {transform_indices = @transform_1, window_bounds = array<i64: 16, 128>}, {transform_indices = @transform_2, window_bounds = array<i64: 1, 8, 128>}]} {
    %c0_i32 = arith.constant 0 : i32
    %0 = arith.cmpi eq, %arg1, %c0_i32 : i32
    %1 = arith.extui %0 : i1 to i32
    %c0_i32_0 = arith.constant 0 : i32
    %2 = arith.cmpi ne, %1, %c0_i32_0 : i32
    scf.if %2 {
      %cst = arith.constant 0.000000e+00 : f32
      %20 = vector.broadcast %cst : f32 to vector<8x128xf32>
      %c0_13 = arith.constant 0 : index
      %c0_14 = arith.constant 0 : index
      %21 = vector.load %arg5[%c0_13, %c0_14] : memref<8x128xf32, #tpu.memory_space<vmem>>, vector<8x128xf32>
      tpu.vector_store %arg5[%c0_13, %c0_14], %20 {strides = array<i32>} : memref<8x128xf32, #tpu.memory_space<vmem>>, vector<8x128xf32>,
      %cst_15 = arith.constant 0.000000e+00 : f32
      %22 = vector.broadcast %cst_15 : f32 to vector<8x128xf32>
      %c0_16 = arith.constant 0 : index
      %c0_17 = arith.constant 0 : index
      %23 = vector.load %arg6[%c0_16, %c0_17] : memref<8x128xf32, #tpu.memory_space<vmem>>, vector<8x128xf32>
      tpu.vector_store %arg6[%c0_16, %c0_17], %22 {strides = array<i32>} : memref<8x128xf32, #tpu.memory_space<vmem>>, vector<8x128xf32>,
    } else {
    }
    %c0 = arith.constant 0 : index
    %c0_1 = arith.constant 0 : index
    %3 = vector.load %arg3[%c0, %c0_1] : memref<16x128xf32, #tpu.memory_space<vmem>>, vector<16x128xf32>
    %c0_2 = arith.constant 0 : index
    %c0_3 = arith.constant 0 : index
    %4 = vector.load %arg2[%c0_2, %c0_3] : memref<16x128xf32, #tpu.memory_space<vmem>>, vector<16x128xf32>
    %c1_i32 = arith.constant 1 : i32
    %5 = arith.muli %arg0, %c1_i32 : i32
    %6 = arith.addi %5, %arg1 : i32
    %c1_i32_4 = arith.constant 1 : i32
    %7 = arith.addi %6, %c1_i32_4 : i32
    %c16_i32 = arith.constant 16 : i32
    %8 = arith.muli %7, %c16_i32 : i32
    %c16_i32_5 = arith.constant 16 : i32
    %9 = arith.cmpi sle, %8, %c16_i32_5 : i32
    %10 = arith.extui %9 : i1 to i32
    %c0_i32_6 = arith.constant 0 : i32
    %11 = arith.cmpi ne, %10, %c0_i32_6 : i32
    scf.if %11 {
      %cst = arith.constant -1.000000e+00 : f32
      %20 = vector.broadcast %cst : f32 to vector<16x128xf32>
      %21 = arith.cmpf one, %3, %20 : vector<16x128xf32>
      %22 = arith.subf %3, %4 : vector<16x128xf32>
      %cst_13 = arith.constant 0.000000e+00 : f32
      %23 = vector.broadcast %cst_13 : f32 to vector<16x128xf32>
      %24 = arith.select %21, %22, %23 : vector<16x128xi1>, vector<16x128xf32>
      %25 = arith.mulf %24, %24 : vector<16x128xf32>
      %26 = arith.extui %21 : vector<16x128xi1> to vector<16x128xi32>
      %27 = arith.sitofp %26 : vector<16x128xi32> to vector<16x128xf32>
      %c0_14 = arith.constant 0 : index
      %c0_15 = arith.constant 0 : index
      %28 = vector.load %arg5[%c0_14, %c0_15] : memref<8x128xf32, #tpu.memory_space<vmem>>, vector<8x128xf32>
      %29 = vector.shape_cast %25 : vector<16x128xf32> to vector<2x8x128xf32>
      %cst_16 = arith.constant dense<0.000000e+00> : vector<8x128xf32>
      %30 = vector.multi_reduction <add>, %29, %cst_16 [0] : vector<2x8x128xf32> to vector<8x128xf32>
      %31 = arith.addf %28, %30 : vector<8x128xf32>
      %c0_17 = arith.constant 0 : index
      %c0_18 = arith.constant 0 : index
      %32 = vector.load %arg5[%c0_17, %c0_18] : memref<8x128xf32, #tpu.memory_space<vmem>>, vector<8x128xf32>
      tpu.vector_store %arg5[%c0_17, %c0_18], %31 {strides = array<i32>} : memref<8x128xf32, #tpu.memory_space<vmem>>, vector<8x128xf32>,
      %c0_19 = arith.constant 0 : index
      %c0_20 = arith.constant 0 : index
      %33 = vector.load %arg6[%c0_19, %c0_20] : memref<8x128xf32, #tpu.memory_space<vmem>>, vector<8x128xf32>
      %34 = vector.shape_cast %27 : vector<16x128xf32> to vector<2x8x128xf32>
      %cst_21 = arith.constant dense<0.000000e+00> : vector<8x128xf32>
      %35 = vector.multi_reduction <add>, %34, %cst_21 [0] : vector<2x8x128xf32> to vector<8x128xf32>
      %36 = arith.addf %33, %35 : vector<8x128xf32>
      %c0_22 = arith.constant 0 : index
      %c0_23 = arith.constant 0 : index
      %37 = vector.load %arg6[%c0_22, %c0_23] : memref<8x128xf32, #tpu.memory_space<vmem>>, vector<8x128xf32>
      tpu.vector_store %arg6[%c0_22, %c0_23], %36 {strides = array<i32>} : memref<8x128xf32, #tpu.memory_space<vmem>>, vector<8x128xf32>,
    } else {
    }
    %c1_i32_7 = arith.constant 1 : i32
    %12 = arith.addi %6, %c1_i32_7 : i32
    %c16_i32_8 = arith.constant 16 : i32
    %13 = arith.muli %12, %c16_i32_8 : i32
    %c16_i32_9 = arith.constant 16 : i32
    %14 = arith.cmpi sgt, %13, %c16_i32_9 : i32
    %15 = arith.extui %14 : i1 to i32
    %c0_i32_10 = arith.constant 0 : i32
    %16 = arith.cmpi ne, %15, %c0_i32_10 : i32
    scf.if %16 {
      %20 = tpu.iota {dimensions = array<i32: 0>} : vector<16x128xi32>
      %c16_i32_13 = arith.constant 16 : i32
      %21 = arith.muli %6, %c16_i32_13 : i32
      %c16_i32_14 = arith.constant 16 : i32
      %22 = arith.subi %c16_i32_14, %21 : i32
      %23 = vector.broadcast %22 : i32 to vector<16x128xi32>
      %24 = arith.cmpi slt, %20, %23 : vector<16x128xi32>
      %cst = arith.constant -1.000000e+00 : f32
      %25 = vector.broadcast %cst : f32 to vector<16x128xf32>
      %26 = arith.cmpf one, %3, %25 : vector<16x128xf32>
      %27 = arith.andi %26, %24 : vector<16x128xi1>
      %28 = arith.subf %3, %4 : vector<16x128xf32>
      %cst_15 = arith.constant 0.000000e+00 : f32
      %29 = vector.broadcast %cst_15 : f32 to vector<16x128xf32>
      %30 = arith.select %27, %28, %29 : vector<16x128xi1>, vector<16x128xf32>
      %31 = arith.mulf %30, %30 : vector<16x128xf32>
      %32 = arith.extui %27 : vector<16x128xi1> to vector<16x128xi32>
      %33 = arith.sitofp %32 : vector<16x128xi32> to vector<16x128xf32>
      %c0_16 = arith.constant 0 : index
      %c0_17 = arith.constant 0 : index
      %34 = vector.load %arg5[%c0_16, %c0_17] : memref<8x128xf32, #tpu.memory_space<vmem>>, vector<8x128xf32>
      %35 = vector.shape_cast %31 : vector<16x128xf32> to vector<2x8x128xf32>
      %cst_18 = arith.constant dense<0.000000e+00> : vector<8x128xf32>
      %36 = vector.multi_reduction <add>, %35, %cst_18 [0] : vector<2x8x128xf32> to vector<8x128xf32>
      %37 = arith.addf %34, %36 : vector<8x128xf32>
      %c0_19 = arith.constant 0 : index
      %c0_20 = arith.constant 0 : index
      %38 = vector.load %arg5[%c0_19, %c0_20] : memref<8x128xf32, #tpu.memory_space<vmem>>, vector<8x128xf32>
      tpu.vector_store %arg5[%c0_19, %c0_20], %37 {strides = array<i32>} : memref<8x128xf32, #tpu.memory_space<vmem>>, vector<8x128xf32>,
      %c0_21 = arith.constant 0 : index
      %c0_22 = arith.constant 0 : index
      %39 = vector.load %arg6[%c0_21, %c0_22] : memref<8x128xf32, #tpu.memory_space<vmem>>, vector<8x128xf32>
      %40 = vector.shape_cast %33 : vector<16x128xf32> to vector<2x8x128xf32>
      %cst_23 = arith.constant dense<0.000000e+00> : vector<8x128xf32>
      %41 = vector.multi_reduction <add>, %40, %cst_23 [0] : vector<2x8x128xf32> to vector<8x128xf32>
      %42 = arith.addf %39, %41 : vector<8x128xf32>
      %c0_24 = arith.constant 0 : index
      %c0_25 = arith.constant 0 : index
      %43 = vector.load %arg6[%c0_24, %c0_25] : memref<8x128xf32, #tpu.memory_space<vmem>>, vector<8x128xf32>
      tpu.vector_store %arg6[%c0_24, %c0_25], %42 {strides = array<i32>} : memref<8x128xf32, #tpu.memory_space<vmem>>, vector<8x128xf32>,
    } else {
    }
    %c0_i32_11 = arith.constant 0 : i32
    %17 = arith.cmpi eq, %arg1, %c0_i32_11 : i32
    %18 = arith.extui %17 : i1 to i32
    %c0_i32_12 = arith.constant 0 : i32
    %19 = arith.cmpi ne, %18, %c0_i32_12 : i32
    scf.if %19 {
      %c0_13 = arith.constant 0 : index
      %c0_14 = arith.constant 0 : index
      %20 = vector.load %arg5[%c0_13, %c0_14] : memref<8x128xf32, #tpu.memory_space<vmem>>, vector<8x128xf32>
      %21 = vector.shape_cast %20 : vector<8x128xf32> to vector<1x8x128xf32>
      %cst = arith.constant dense<0.000000e+00> : vector<1xf32>
      %22 = vector.multi_reduction <add>, %21, %cst [1, 2] : vector<1x8x128xf32> to vector<1xf32>
      %23 = vector.shape_cast %22 : vector<1xf32> to vector<1x1x1xf32>
      %24 = vector.extract %23[0, 0, 0] : f32 from vector<1x1x1xf32>
      %c0_15 = arith.constant 0 : index
      %c0_16 = arith.constant 0 : index
      %25 = vector.load %arg6[%c0_15, %c0_16] : memref<8x128xf32, #tpu.memory_space<vmem>>, vector<8x128xf32>
      %26 = vector.shape_cast %25 : vector<8x128xf32> to vector<1x8x128xf32>
      %cst_17 = arith.constant dense<0.000000e+00> : vector<1xf32>
      %27 = vector.multi_reduction <add>, %26, %cst_17 [1, 2] : vector<1x8x128xf32> to vector<1xf32>
      %28 = vector.shape_cast %27 : vector<1xf32> to vector<1x1x1xf32>
      %29 = vector.extract %28[0, 0, 0] : f32 from vector<1x1x1xf32>
      %30 = tpu.iota {dimensions = array<i32: 0>} : vector<8x128xi32>
      %31 = tpu.iota {dimensions = array<i32: 1>} : vector<8x128xi32>
      %c0_i32_18 = arith.constant 0 : i32
      %32 = vector.broadcast %c0_i32_18 : i32 to vector<8x128xi32>
      %33 = arith.cmpi eq, %30, %32 : vector<8x128xi32>
      %c0_i32_19 = arith.constant 0 : i32
      %34 = vector.broadcast %c0_i32_19 : i32 to vector<8x128xi32>
      %35 = arith.cmpi eq, %31, %34 : vector<8x128xi32>
      %36 = arith.andi %33, %35 : vector<8x128xi1>
      %c0_i32_20 = arith.constant 0 : i32
      %37 = vector.broadcast %c0_i32_20 : i32 to vector<8x128xi32>
      %38 = arith.cmpi eq, %30, %37 : vector<8x128xi32>
      %c1_i32_21 = arith.constant 1 : i32
      %39 = vector.broadcast %c1_i32_21 : i32 to vector<8x128xi32>
      %40 = arith.cmpi eq, %31, %39 : vector<8x128xi32>
      %41 = arith.andi %38, %40 : vector<8x128xi1>
      %cst_22 = arith.constant 0.000000e+00 : f32
      %42 = vector.broadcast %29 : f32 to vector<8x128xf32>
      %43 = vector.broadcast %cst_22 : f32 to vector<8x128xf32>
      %44 = arith.select %41, %42, %43 : vector<8x128xi1>, vector<8x128xf32>
      %45 = vector.broadcast %24 : f32 to vector<8x128xf32>
      %46 = arith.select %36, %45, %44 : vector<8x128xi1>, vector<8x128xf32>
      %c0_23 = arith.constant 0 : index
      %c0_24 = arith.constant 0 : index
      %c0_25 = arith.constant 0 : index
      %47 = vector.load %arg4[%c0_23, %c0_24, %c0_25] : memref<1x8x128xf32, #tpu.memory_space<vmem>>, vector<1x8x128xf32>
      %48 = vector.shape_cast %47 : vector<1x8x128xf32> to vector<8x128xf32>
      %49 = vector.shape_cast %46 : vector<8x128xf32> to vector<1x8x128xf32>
      tpu.vector_store %arg4[%c0_23, %c0_24, %c0_25], %49 {strides = array<i32>} : memref<1x8x128xf32, #tpu.memory_space<vmem>>, vector<1x8x128xf32>,
    } else {
    }
    return
  }
  func.func @transform_0(%arg0: i32, %arg1: i32) -> (i32, i32) {
    %c1_i32 = arith.constant 1 : i32
    %0 = arith.muli %arg0, %c1_i32 : i32
    %1 = arith.addi %0, %arg1 : i32
    %c0_i32 = arith.constant 0 : i32
    %2 = arith.minsi %1, %c0_i32 : i32
    %c0_i32_0 = arith.constant 0 : i32
    %c0_i32_1 = arith.constant 0 : i32
    return %2, %c0_i32_0 : i32, i32
  }
  func.func @transform_1(%arg0: i32, %arg1: i32) -> (i32, i32) {
    %c1_i32 = arith.constant 1 : i32
    %0 = arith.muli %arg0, %c1_i32 : i32
    %1 = arith.addi %0, %arg1 : i32
    %c0_i32 = arith.constant 0 : i32
    %2 = arith.minsi %1, %c0_i32 : i32
    %c0_i32_0 = arith.constant 0 : i32
    %c0_i32_1 = arith.constant 0 : i32
    return %2, %c0_i32_0 : i32, i32
  }
  func.func @transform_2(%arg0: i32, %arg1: i32) -> (i32, i32, i32) {
    %c0_i32 = arith.constant 0 : i32
    %c0_i32_0 = arith.constant 0 : i32
    %c0_i32_1 = arith.constant 0 : i32
    return %arg0, %c0_i32, %c0_i32_0 : i32, i32, i32
  }
}

</mosaic_0001>

<bundles_post_ra>
// kernel: tpu_custom_call.1
= control target key start
LH: loop header
LB: loop body
LE: loop exit
PB: predicated region body
PF: predicated region fallthrough
CT: control target
= control target key end

     0   :  { %7 = vsyncpa [#allocation5], 0  ;;  %s1004_s0 = inlined_call_operand.hbm [shape: f32[16,128], index: 0, kind: input, shape index: {}]   ;;  %s1005_s1 = inlined_call_operand.hbm [shape: f32[16,128], index: 1, kind: input, shape index: {}]   ;;  %s1006_s2 = inlined_call_operand.hbm [shape: f32[2,8,128], index: 2, kind: output, shape index: {}]  }
   0x1   :  { %9 = vsyncpa [#allocation5 + $0x1], 0 }
   0x2   :  { %10 = vsyncpa [#allocation8], 0 }
   0x3   :  { %12 = vsyncpa [#allocation8 + $0x1], 0 }
   0x4   :  { %13 = vsyncpa [#allocation6], 0 }
   0x5   :  { %15 = vsyncpa [#allocation6 + $0x1], 0  ;;  %s785_s9 = smov 0   ;;  %s787_s10 = smov 0  }
   0x6   :  { %s789_s11 = smov 0   ;;  %s791_s12 = smov 0  }
   0x7   :  { %s793_s13 = smov 0   ;;  %s795_s14 = smov 0  }
   0x8   :  { %s797_s15 = smov 0   ;;  %s799_s16 = smov 0  }
   0x9 LB: > { %s463_s17 = sadd.s32 4294967295, %s760_s16   ;;  %s464_s18 = sadd.s32 4294967294, %s760_s16   ;;  %s760_s16 = sphi %s799_s16, %s21_s16   ;;  %s756_s15 = sphi %s797_s15, %s1025_s15   ;;  %s752_s14 = sphi %s795_s14, %s1024_s14   ;;  %s748_s13 = sphi %s793_s13, %s994_s13   ;;  %s744_s12 = sphi %s791_s12, %s1023_s12   ;;  %s740_s11 = sphi %s789_s11, %s1022_s11   ;;  %s736_s10 = sphi %s787_s10, %s1021_s10   ;;  %s732_s9 = sphi %s785_s9, %s1020_s9  }
   0xa   : > { %s33_s19 = sadd.s32 1, %s756_s15  ;;  %p729_p1 = scmp.ne.s32.totalorder %s748_s13, 0 }
   0xb   : > { %p35_p0 = scmp.ge.s32.totalorder %s33_s19, 2  ;;  %p54_p2 = scmp.eq.s32.totalorder %s760_s16, 0 }
   0xc   : > { %p59_p3 = scmp.ne.s32.totalorder %s748_s13, %s744_s12  ;;  %p60_p5 = scmp.eq.s32.totalorder %s463_s17, 0 }
   0xd   : > { %s1027_s19 = smov (%p35_p0, %s33_s19), 0  ;;  %p831_p4 = por %p729_p1, %p54_p2 }
   0xe   : > { %p835_p6 = por %p60_p5, %p59_p3  ;;  %s101_s22 = ssub.s32 %s756_s15, %s1027_s19 }
   0xf   : > { %p102_p7 = scmp.eq.s32.totalorder %s101_s22, 0  ;;  %s104_s23 = sadd.s32 1, %s740_s11 }
  0x10   : > { %s1010_s21 = scalar_select %p835_p6, 1, 0 }
  0x11   : > { %s843_s24 = scalar_select %p102_p7, %s740_s11, %s104_s23  }
  0x12   : > { %p114_p8 = scmp.ne.s32.totalorder %s740_s11, %s736_s10  ;;  %p115_p9 = scmp.eq.s32.totalorder %s463_s17, 1 }
  0x13   : > { %p120_p10 = scmp.ne.s32.totalorder %s736_s10, %s732_s9  ;;  %p121_p11 = scmp.eq.s32.totalorder %s464_s18, 1 }
  0x14   : > { %p849_p12 = por %p115_p9, %p114_p8  ;;  %p514_p1 = scmp.lt.s32.totalorder %s760_s16, 2 }
  0x15   : > { %p854_p0 = por %p121_p11, %p120_p10  ;;  %s762_s27 = smov [#allocation4]  }
  0x16   : > { %s1011_s25 = scalar_select %p849_p12, 1, 0 }
  0x17   : > { %s1012_s26 = scalar_select %p854_p0, 1, 0 }
  0x18   : > { %s155_s28 = sshll.u32 %s762_s27, 4  ;;  %p861_p2 = pnand %p514_p1, %p831_p4  ;;  %s156_s28 = int_to_ptr.vmem [resolvable:$true] %s155_s28 }
  0x19   : > { %s593_s4 = scalar_lea.hbm %s1004_s0, 256 }
  0x1a   : > { %p594_p3 = scmp.ne.s32.totalorder %s1004_s0, %s593_s4  ;;  %p595_p5 = pneg %p861_p2 }
  0x1b   : > { %p600_p8 = scmp.lt.u32.totalorder %s593_s4, %s593_s4  ;;  %p602_p9 = scmp.lt.u32.totalorder %s593_s4, %s1004_s0 }
  0x1c   : > { %p596_p7 = pnand %p595_p5, %p594_p3 }
  0x1d   : > { %p603_p10 = por %p602_p9, %p600_p8 }
  0x1e   : > { %p597_p4 = pneg %p596_p7 }
  0x20   : > { %p604_p11 = pnand %p603_p10, %p597_p4 }
  0x22   : > { %607 = shalt.err (!%p604_p11)
}
  0x23   : > { %s608_s12 = scalar_lea.vmem %s156_s28, 256  ;;  %s615_s17 = scalar_lea.vmem %s156_s28, 512 }
  0x24   : > { %p609_p1 = scmp.ne.s32.totalorder %s156_s28, %s608_s12  ;;  %p616_p12 = scmp.lt.s32.totalorder %s156_s28, %s156_s28 }
  0x25   : > { %p617_p6 = scmp.lt.s32.totalorder %s615_s17, %s608_s12 }
  0x26   : > { %p611_p13 = pnand %p609_p1, %p595_p5 }
  0x27   : > { %p618_p3 = por %p617_p6, %p616_p12 }
  0x28   : > { %p612_p0 = pneg %p611_p13 }
  0x2a   : > { %p619_p7 = pnand %p618_p3, %p612_p0 }
  0x2c   : > { %622 = shalt.err (!%p619_p7)
}
  0x2d   : > { %s763_s18 = smov 128   ;;  %s764_s20 = smov 8  }
  0x2e   : > { %506 = dma.hbm_to_vmem [thread:$0]  (!%p861_p2), %s1004_s0, 256, %s156_s28, [#allocation5], %s763_s18, %s763_s18, %s764_s20  }
  0x2f   : > { %p473_p13 = scmp.ge.s32.totalorder %s760_s16, 1  ;;  %p187_p4 = scmp.lt.s32.totalorder %s760_s16, 3 }
  0x30   : > { %s765_s30 = smov [#allocation7]   ;;  %s623_s6 = scalar_lea.hbm %s1005_s1, 256 }
  0x31   : > { %p892_p8 = pnand %p473_p13, %p187_p4  ;;  %s179_s3 = sshll.u32 %s765_s30, 4  ;;  %s180_s3 = int_to_ptr.vmem [resolvable:$true] %s179_s3 }
  0x32   : > { %p624_p6 = scmp.ne.s32.totalorder %s1005_s1, %s623_s6  ;;  %p630_p9 = scmp.lt.u32.totalorder %s623_s6, %s623_s6 }
  0x33   : > { %s1014_s27 = scalar_select %p892_p8, 1, 0 }
  0x34   : > { %p626_p12 = pnand %p624_p6, %p595_p5  ;;  %p632_p10 = scmp.lt.u32.totalorder %s623_s6, %s1005_s1 }
  0x36   : > { %p627_p0 = pneg %p626_p12  ;;  %p633_p11 = por %p632_p10, %p630_p9 }
  0x38   : > { %p634_p1 = pnand %p633_p11, %p627_p0 }
  0x3a   : > { %637 = shalt.err (!%p634_p1)
}
  0x3b   : > { %s638_s17 = scalar_lea.vmem %s180_s3, 256  ;;  %s645_s22 = scalar_lea.vmem %s180_s3, 512 }
  0x3c   : > { %p639_p3 = scmp.ne.s32.totalorder %s180_s3, %s638_s17  ;;  %p646_p4 = scmp.lt.s32.totalorder %s180_s3, %s180_s3 }
  0x3d   : > { %p647_p8 = scmp.lt.s32.totalorder %s645_s22, %s638_s17 }
  0x3e   : > { %p641_p7 = pnand %p639_p3, %p595_p5 }
  0x3f   : > { %p648_p6 = por %p647_p8, %p646_p4 }
  0x40   : > { %p642_p13 = pneg %p641_p7 }
  0x42   : > { %p649_p12 = pnand %p648_p6, %p642_p13 }
  0x44   : > { %652 = shalt.err (!%p649_p12)
}
  0x45   : > { %509 = dma.hbm_to_vmem [thread:$0]  (!%p861_p2), %s1005_s1, 256, %s180_s3, [#allocation8], %s763_s18, %s763_s18, %s764_s20  }
  0x46   : > { %p1015_p0 = scmp.ne.s32.totalorder %s1014_s27, 0 }
  0x47   : > { %s193_s4 = sand.u32 (!%p1015_p0), 1, %s748_s13   ;;  %p1016_p5 = scmp.ne.s32.totalorder (!%p1015_p0), %s1010_s21, 0 }
  0x48   : > { %191 = sbr.rel (%p1015_p0) target bundleno = 344 (0x158), region = 28  ;;  %s474_s5 = sshll.u32 (!%p1015_p0), %s193_s4, 4 }
  0x49   : > { %s194_s6 = scalar_lea.sflag (!%p1015_p0), [#allocation5], %s193_s4  ;;  %s197_s7 = scalar_lea.vmem (!%p1015_p0), [#allocation4], %s474_s5 }
  0x4f   : > { %718 = dma.done.wait (%p1016_p5), %s194_s6, 256  }
  0x50   : > { %720 = vsyncadd (%p1016_p5), %s194_s6, 4294967040  ;;  %s203_s29 = scalar_lea.sflag [#allocation8], %s193_s4  ;;  %s206_s8 = scalar_lea.vmem [#allocation7], %s474_s5 }
  0x51   : > { %722 = dma.done.wait (%p1016_p5), %s203_s29, 256  }
  0x52   : > { %724 = vsyncadd (%p1016_p5), %s203_s29, 4294967040  ;;  %s229_s18 = sand.u32 1, %s736_s10   ;;  %s491_s20 = sshll.u32 %s752_s14, 4  ;;  %v766_v0 = vmov 0.0   ;;  %v246_v1 = vld [vmem:[%s206_s8] sm:$0xff]  ;;  %v247_v2 = vld [vmem:[%s206_s8 + $0x8] sm:$0xff] }
  0x53   : > { %s934_s27 = sshll.u32 %s229_s18, 3  ;;  %244 = vst [vmem:[#allocation2] sm:$0xff] %v766_v0  ;;  %245 = vst [vmem:[#allocation3] sm:$0xff] %v766_v0  ;;  %s492_s3 = sadd.s32 16, %s491_s20  ;;  %v248_v3 = vld [vmem:[%s197_s7] sm:$0xff]  ;;  %v249_v4 = vld [vmem:[%s197_s7 + $0x8] sm:$0xff] }
  0x54   : > { %s231_s21 = scalar_lea.vmem [#allocation9], %s934_s27  ;;  %p478_p2 = scmp.gt.s32.totalorder %s492_s3, 16 }
  0x55   : > { %vm257_vm0 = vcmp.ne.f32.partialorder (!%p478_p2), %v246_v1, -1.0  ;;  %vm258_vm1 = vcmp.ne.f32.partialorder (!%p478_p2), %v247_v2, -1.0  ;;  %v259_v5 = vsub.f32 (!%p478_p2), %v246_v1, %v248_v3  ;;  %v260_v6 = vsub.f32 (!%p478_p2), %v247_v2, %v249_v4 }
  0x56   : > { %256 = sbr.rel (%p478_p2) target bundleno = 95 (0x5f), region = 44  ;;  %v767_v9 = vmov (!%p478_p2), 0.0  }
  0x57   : > { %v261_v7 = vsel (!%p478_p2), %vm257_vm0, %v259_v5, 0.0  ;;  %v262_v8 = vsel (!%p478_p2), %vm258_vm1, %v260_v6, 0.0  ;;  %v479_v10 = vsel (!%p478_p2), %vm257_vm0, 1.0, %v767_v9  ;;  %v480_v11 = vsel (!%p478_p2), %vm258_vm1, 1.0, %v767_v9 }
  0x58   : > { %v263_v13 = vmul.f32 (!%p478_p2), %v261_v7, %v261_v7  ;;  %v264_v14 = vmul.f32 (!%p478_p2), %v262_v8, %v262_v8  ;;  %v274_v15 = vadd.f32 (!%p478_p2), %v480_v11, %v479_v10 }
  0x5a   : > { %v273_v12 = vld [vmem:[#allocation3] sm:$0xff] (!%p478_p2)  ;;  %v269_v16 = vld [vmem:[#allocation2] sm:$0xff] (!%p478_p2)  ;;  %v270_v17 = vadd.f32 (!%p478_p2), %v264_v14, %v263_v13 }
  0x5b   : > { %v275_v18 = vadd.f32 (!%p478_p2), %v274_v15, %v273_v12 }
  0x5c   : > { %v271_v19 = vadd.f32 (!%p478_p2), %v270_v17, %v269_v16 }
  0x5d   : > { %276 = vst [vmem:[#allocation3] sm:$0xff] %v275_v18 }
  0x5e   : > { %272 = vst [vmem:[#allocation2] sm:$0xff] %v271_v19 }
  0x5f PF: > { %p481_p8 = scmp.le.s32.totalorder %s492_s3, 16 }
  0x60   : > { %v281_v20 = vlaneseq (!%p481_p8)  ;;  %s285_s28 = ssub.s32 (!%p481_p8), 16, %s491_s20  ;;  %vm289_vm2 = vcmp.ne.f32.partialorder (!%p481_p8), %v246_v1, -1.0  ;;  %v293_v23 = vsub.f32 (!%p481_p8), %v246_v1, %v248_v3  ;;  %vm290_vm4 = vcmp.ne.f32.partialorder (!%p481_p8), %v247_v2, -1.0 }
  0x61   : > { %280 = sbr.rel (%p481_p8) target bundleno = 112 (0x70), region = 48  ;;  %v286_v21 = vstv (!%p481_p8), %s285_s28  ;;  %v294_v25 = vsub.f32 (!%p481_p8), %v247_v2, %v249_v4  ;;  %v768_v27 = vmov (!%p481_p8), 0.0  }
  0x62   : > { %v282_v22 = vshrl.u32 (!%p481_p8), %v281_v20, 7 }
  0x64   : > { %v283_v24 = vadd.s32 (!%p481_p8), 8, %v282_v22  ;;  %vm287_vm3 = vcmp.lt.s32.totalorder (!%p481_p8), %v282_v22, %v286_v21 }
  0x65   : > { %vm291_vm5 = vmand (!%p481_p8), %vm289_vm2, %vm287_vm3  ;;  %v303_v35 = vld [vmem:[#allocation2] sm:$0xff] (!%p481_p8) }
  0x66   : > { %vm288_vm6 = vcmp.lt.s32.totalorder (!%p481_p8), %v283_v24, %v286_v21  ;;  %v295_v26 = vsel (!%p481_p8), %vm291_vm5, %v293_v23, 0.0  ;;  %v483_v28 = vsel (!%p481_p8), %vm291_vm5, 1.0, %v768_v27  ;;  %v307_v32 = vld [vmem:[#allocation3] sm:$0xff] (!%p481_p8) }
  0x67   : > { %vm292_vm7 = vmand (!%p481_p8), %vm290_vm4, %vm288_vm6  ;;  %v297_v29 = vmul.f32 (!%p481_p8), %v295_v26, %v295_v26 }
  0x68   : > { %v296_v30 = vsel %vm292_vm7, %v294_v25, 0.0  ;;  %v484_v31 = vsel %vm292_vm7, 1.0, %v768_v27 }
  0x69   : > { %v298_v33 = vmul.f32 %v296_v30, %v296_v30  ;;  %v308_v34 = vadd.f32 %v484_v31, %v483_v28 }
  0x6b   : > { %v304_v36 = vadd.f32 %v298_v33, %v297_v29  ;;  %v309_v37 = vadd.f32 %v308_v34, %v307_v32 }
  0x6d   : > { %v305_v38 = vadd.f32 %v304_v36, %v303_v35  ;;  %310 = vst [vmem:[#allocation3] sm:$0xff] %v309_v37 }
  0x6f   : > { %306 = vst [vmem:[#allocation2] sm:$0xff] %v305_v38 }
  0x70 PF: > { %v334_v55 = vlaneseq  ;;  %s486_s12 = sshll.u32 %s752_s14, 7  ;;  %s362_s22 = sshll.u32 %s231_s21, 4  ;;  %s949_s22 = int_to_ptr.vmem [resolvable:$true] %s362_s22 }
  0x71   : > { %s947_s5 = scalar_lea.hbm %s1006_s2, %s486_s12  ;;  %s349_s14 = scalar_lea.sflag [#allocation6], %s229_s18 }
  0x72   : > { %v335_v56 = vshrl.u32 %v334_v55, 7  ;;  %v337_v57 = vand.u32 127, %v334_v55  ;;  %s653_s6 = scalar_lea.vmem %s949_s22, 128  ;;  %p1017_p10 = scmp.ne.s32.totalorder %s1011_s25, 0 }
  0x73   : > { %p654_p9 = scmp.ne.s32.totalorder %s949_s22, %s653_s6  ;;  %s769_s7 = smov [#allocation9]  }
  0x74   : > { %v324_v40 = vld [vmem:[#allocation3] sm:$0xff]  ;;  %vm338_vm8 = vcmp.eq.s32.totalorder %v335_v56, 0  ;;  %vm341_vm9 = vcmp.eq.s32.totalorder %v337_v57, 1  ;;  %vm339_vm10 = vcmp.eq.s32.totalorder %v337_v57, 0  ;;  %s657_s29 = sshll.u32 %s769_s7, 4  ;;  %s658_s29 = int_to_ptr.vmem [resolvable:$false] %s657_s29 }
  0x75   : > { %vm342_vm11 = vmand %vm338_vm8, %vm341_vm9  ;;  %p655_p11 = pnand %p654_p9, %p1017_p10  ;;  %s659_s8 = scalar_lea.vmem %s658_s29, 256 }
  0x76   : > { %v314_v39 = vld [vmem:[#allocation2] sm:$0xff]  ;;  %vm340_vm12 = vmand %vm338_vm8, %vm339_vm10  ;;  %p660_p3 = scmp.lt.s32.totalorder %s949_s22, %s658_s29  ;;  %p661_p7 = scmp.lt.s32.totalorder %s659_s8, %s653_s6 }
  0x77   : > { %315 = vadd.xlane.f32.xlu0 %v314_v39  ;;  %p656_p1 = pneg %p655_p11 }
  0x78   : > { %p662_p13 = por %p661_p7, %p660_p3 }
  0x7a   : > { %p663_p4 = pnand %p662_p13, %p656_p1 }
  0x7b   : > { %325 = vadd.xlane.f32.xlu0 %v324_v40 }
 0x104   : > { %v316_v41 = vpop.xlane.xlu0 %315 }
 0x105   : > { %v317_v42 = vrot.slane %v316_v41, 4 }
 0x107   : > { %v318_v43 = vadd.f32 %v317_v42, %v316_v41 }
 0x108   : > { %v326_v44 = vpop.xlane.xlu0 %325 }
 0x109   : > { %v319_v45 = vrot.slane %v318_v43, 2  ;;  %v327_v46 = vrot.slane %v326_v44, 4 }
 0x10b   : > { %v328_v47 = vadd.f32 %v327_v46, %v326_v44  ;;  %v320_v48 = vadd.f32 %v319_v45, %v318_v43 }
 0x10d   : > { %v329_v49 = vrot.slane %v328_v47, 2  ;;  %v321_v50 = vrot.slane %v320_v48, 1 }
 0x10f   : > { %v330_v51 = vadd.f32 %v329_v49, %v328_v47  ;;  %v322_v52 = vadd.f32 %v321_v50, %v320_v48 }
 0x111   : > { %493 = vpush %v322_v52  ;;  %v331_v53 = vrot.slane %v330_v51, 1 }
 0x113   : > { %v332_v54 = vadd.f32 %v331_v53, %v330_v51 }
 0x115   : > { %495 = vpush %v332_v54 }
 0x142   : > { %s494_s17 = spop %493 }
 0x143   : > { %v345_v59 = vstv %s494_s17 }
 0x146   : > { %s496_s23 = spop %495 }
 0x147   : > { %v343_v58 = vstv %s496_s23 }
 0x148   : > { %v344_v60 = vsel %vm342_vm11, %v343_v58, 0.0 }
 0x149   : > { %v346_v61 = vsel %vm340_vm12, %v345_v59, %v344_v60 }
 0x14a   : > { %347 = vst [vmem:[%s231_s21] sm:$0xff] %v346_v61 }
 0x14b   : > { %666 = shalt.err (!%p663_p4)
}
 0x14c   : > { %s667_s18 = scalar_lea.hbm %s947_s5, 128  ;;  %s671_s3 = scalar_lea.hbm %s1006_s2, 256 }
 0x14d   : > { %p668_p6 = scmp.ne.s32.totalorder %s947_s5, %s667_s18  ;;  %p672_p5 = scmp.lt.u32.totalorder %s947_s5, %s1006_s2 }
 0x14e   : > { %p673_p2 = scmp.lt.u32.totalorder %s671_s3, %s667_s18  ;;  %p675_p9 = scmp.lt.u32.totalorder %s667_s18, %s947_s5 }
 0x14f   : > { %p669_p12 = pnand %p668_p6, %p1017_p10 }
 0x150   : > { %p674_p8 = por %p673_p2, %p672_p5 }
 0x151   : > { %p670_p0 = pneg %p669_p12 }
 0x152   : > { %p676_p11 = por %p675_p9, %p674_p8 }
 0x154   : > { %p677_p1 = pnand %p676_p11, %p670_p0 }
 0x156   : > { %680 = shalt.err (!%p677_p1)
}
 0x157   : > { %501 = dma.vmem_to_hbm [thread:$0]  (%p1017_p10), %s949_s22, 128, %s947_s5, %s349_s14  }
 0x158 PF: > { %s374_s12 = sand.u32 1, %s732_s9   ;;  %p1018_p3 = scmp.ne.s32.totalorder %s1012_s26, 0 }
 0x159   : > { %p1019_p7 = scmp.ge.s32.totalorder %s760_s16, 2  ;;  %s375_s17 = scalar_lea.sflag [#allocation6], %s374_s12 }
 0x15b   : > { %p511_p13 = pnand %p1019_p7, %p1018_p3 }
 0x15d   : > { %726 = dma.done.wait (!%p511_p13), %s375_s17, 128  }
 0x15e   : > { %728 = vsyncadd (!%p511_p13), %s375_s17, 4294967168  ;;  %s21_s16 = sadd.s32 1, %s760_s16   ;;  %s1020_s9 = smov %s736_s10 }
 0x15f   : > { %p18_p4 = scmp.ge.s32.totalorder %s21_s16, 4   ;;  %s1021_s10 = smov %s740_s11 }
 0x160   : > { %s1022_s11 = smov %s843_s24  ;;  %s1023_s12 = smov %s748_s13 }
 0x161   : > { %s994_s13 = smov 0   ;;  %s1024_s14 = smov %s756_s15 }
 0x162   : > { %s1025_s15 = smov %s1027_s19  ;;  %20 = sbr.rel (!%p18_p4) target bundleno = 9 (0x9), region = 102 }
 0x169   :  { %380 = vsyncpa [#allocation5], 1 }
 0x16a   :  { %382 = vsyncpa [#allocation5 + $0x1], 1 }
 0x16b   :  { %383 = vsyncpa [#allocation8], 1 }
 0x16c   :  { %385 = vsyncpa [#allocation8 + $0x1], 1 }
 0x16d   :  { %386 = vsyncpa [#allocation6], 1 }
 0x16e   :  { %388 = vsyncpa [#allocation6 + $0x1], 1 }

</bundles_post_ra>
